<compile_context>
chip_gen: v6e
topology: v6e:2x2x1
jax: 0.10.0
libtpu: 0.0.40
codegen_flags: <defaults>
</compile_context>

<pallas_src>
import jax
import jax.numpy as jnp
from jax.experimental import pallas as pl
from jax.experimental.pallas import tpu as pltpu

_NEG_LARGE = -1e30  # effectively -inf for padded logit columns (f32-safe)


def _round_up(x, m):
    return (x + m - 1) // m * m


def _choose_tm(B, block_m):
    """Batch tile: multiple of 8, <= block_m, prefers dividing B exactly,
    and aims for >=4 grid steps when B allows it (v7x megacore / pipelining)."""
    block_m = max(8, (block_m // 8) * 8)
    tm = max(8, min(block_m, _round_up(pl.cdiv(B, 4), 8)))
    # Largest multiple-of-8 tile <= tm that divides B -> no batch re-pad.
    for cand in range(tm, 7, -8):
        if B % cand == 0:
            return cand
    return tm  # ragged batch: accept a padded final tile


def _make_kernel(n_out, n_out_p):
    def kernel(x_ref, w1_ref, b1_ref, w2_ref, b2_ref, o_ref):
        # fc1 + ReLU.  x is loaded as f32 and cast to the weight dtype in
        # registers (bf16 MXU path with zero extra HBM traffic); accumulate f32.
        x = x_ref[...].astype(w1_ref.dtype)
        h = jnp.dot(x, w1_ref[...], preferred_element_type=jnp.float32)
        h = jnp.maximum(h + b1_ref[...], 0.0)

        # fc2 (cast the f32 ReLU activations to the weight dtype; no-op for f32
        # weights -- documented precision trade-off for the bf16 default).
        logits = jnp.dot(h.astype(w2_ref.dtype), w2_ref[...],
                         preferred_element_type=jnp.float32) + b2_ref[...]

        # softmax over dim=1 on the lane-dense padded tile.  Padded columns
        # carry a -1e30 bias -> exp()==0 -> denominator is exact.
        m = jnp.max(logits, axis=-1, keepdims=True)
        e = jnp.exp(logits - m)
        denom = jnp.sum(e, axis=-1, keepdims=True)
        probs = e / denom  # exact divide (strict PyTorch softmax parity)

        if n_out != n_out_p:
            probs = probs[:, :n_out]  # compact store: real columns only
        o_ref[...] = probs.astype(o_ref.dtype)

    return kernel


def prepare_params(w1, b1, w2, b2, matmul_dtype=jnp.bfloat16):
    """One-time weight preparation (pad lane dims to 128, cast matmul inputs).

    w1: [n_in, hidden], w2: [hidden, n_out] (already transposed vs PyTorch's
    [out, in]).  Biases stay f32; only the matmul operands take matmul_dtype.
    """
    w1 = jnp.asarray(w1, jnp.float32)
    w2 = jnp.asarray(w2, jnp.float32)
    b1 = jnp.asarray(b1, jnp.float32).reshape(1, -1)
    b2 = jnp.asarray(b2, jnp.float32).reshape(1, -1)

    n_in, hidden = w1.shape
    n_out = w2.shape[1]
    hidden_p = _round_up(hidden, 128)
    n_out_p = _round_up(n_out, 128)

    w1p = jnp.zeros((n_in, hidden_p), jnp.float32).at[:, :hidden].set(w1)
    b1p = jnp.zeros((1, hidden_p), jnp.float32).at[:, :hidden].set(b1)
    w2p = jnp.zeros((hidden_p, n_out_p), jnp.float32).at[:hidden, :n_out].set(w2)
    # Padded output columns get a huge negative bias so softmax gives them 0.
    b2p = jnp.full((1, n_out_p), _NEG_LARGE, jnp.float32).at[:, :n_out].set(b2)

    if matmul_dtype is not None and matmul_dtype != jnp.float32:
        w1p = w1p.astype(matmul_dtype)
        w2p = w2p.astype(matmul_dtype)

    return {
        "w1": w1p, "b1": b1p, "w2": w2p, "b2": b2p,
        "n_in": n_in, "n_out": n_out,
        "hidden_p": hidden_p, "n_out_p": n_out_p,
    }


def net_forward(x, params, *, block_m=2048, buffers=2):
    """Forward pass of Net.  x: [B, n_in]; params: output of prepare_params."""
    B, n_in = x.shape
    assert n_in == params["n_in"]
    n_out = params["n_out"]
    hidden_p = params["hidden_p"]
    n_out_p = params["n_out_p"]
    w1p, b1p, w2p, b2p = params["w1"], params["b1"], params["w2"], params["b2"]

    # --- batch tiling (multiple of 8; prefers tiles that divide B exactly) ---
    tm = _choose_tm(B, block_m)
    Bp = _round_up(B, tm)
    xk = x
    if Bp != B:  # ragged batch: pad the final tile with zero rows
        xk = jnp.zeros((Bp, n_in), x.dtype).at[:B].set(x)
    grid = (Bp // tm,)

    x_item = jnp.dtype(xk.dtype).itemsize
    w_item = jnp.dtype(w1p.dtype).itemsize

    cost = pl.CostEstimate(
        flops=2 * Bp * (n_in * hidden_p + hidden_p * n_out_p),
        transcendentals=Bp * n_out_p,
        bytes_accessed=(Bp * n_in * x_item
                        + (n_in * hidden_p + hidden_p * n_out_p) * w_item
                        + (hidden_p + n_out_p) * 4
                        + Bp * n_out * 4),
    )

    # Per-step VMEM estimate (double-buffered x/out tiles + resident weights +
    # f32 intermediates); set the scoped limit with headroom, capped safely
    # below v7x's 64 MiB physical VMEM.
    est = (2 * tm * n_in * x_item
           + 2 * tm * n_out * 4
           + (n_in * hidden_p + hidden_p * n_out_p) * w_item
           + (hidden_p + n_out_p) * 4
           + 6 * tm * max(hidden_p, n_out_p) * 4)
    vmem_limit = int(min(max(2 * est, 32 * 1024 * 1024), 56 * 1024 * 1024))

    def _tiled_spec(shape, idx):
        if buffers and buffers > 2:
            return pl.BlockSpec(shape, idx, pipeline_mode=pl.Buffered(buffers))
        return pl.BlockSpec(shape, idx)

    out = pl.pallas_call(
        _make_kernel(n_out, n_out_p),
        out_shape=jax.ShapeDtypeStruct((Bp, n_out), jnp.float32),
        grid=grid,
        in_specs=[
            _tiled_spec((tm, n_in), lambda i: (i, 0)),           # x: tiled over batch
            pl.BlockSpec((n_in, hidden_p), lambda i: (0, 0)),    # W1: VMEM-resident
            pl.BlockSpec((1, hidden_p), lambda i: (0, 0)),       # b1: VMEM-resident
            pl.BlockSpec((hidden_p, n_out_p), lambda i: (0, 0)), # W2: VMEM-resident
            pl.BlockSpec((1, n_out_p), lambda i: (0, 0)),        # b2: VMEM-resident
        ],
        out_specs=_tiled_spec((tm, n_out), lambda i: (i, 0)),    # compact output
        compiler_params=pltpu.CompilerParams(
            dimension_semantics=("parallel",),
            vmem_limit_bytes=vmem_limit),
        cost_estimate=cost,
    )(xk, w1p, b1p, w2p, b2p)

    return out if Bp == B else out[:B]


def net_reference(x, w1, b1, w2, b2):
    h = jnp.maximum(x @ w1 + b1, 0.0)
    return jax.nn.softmax(h @ w2 + b2, axis=1)


def init_params(key, n_in, n_out):
    """Deterministic PyTorch-style nn.Linear init (uniform(-1/sqrt(fan_in), +))."""
    hidden = n_in * 3
    k1, k2, k3, k4 = jax.random.split(key, 4)
    bound1 = 1.0 / jnp.sqrt(jnp.float32(n_in))
    bound2 = 1.0 / jnp.sqrt(jnp.float32(hidden))
    # Stored as [in, out] (transposed relative to PyTorch's [out, in]).
    w1 = jax.random.uniform(k1, (n_in, hidden), jnp.float32, -bound1, bound1)
    b1 = jax.random.uniform(k2, (1, hidden), jnp.float32, -bound1, bound1)
    w2 = jax.random.uniform(k3, (hidden, n_out), jnp.float32, -bound2, bound2)
    b2 = jax.random.uniform(k4, (1, n_out), jnp.float32, -bound2, bound2)
    return w1, b1, w2, b2


if __name__ == "__main__":
    # LoadData() shapes are unknown; pick small synthetic sizes consistent with
    # the module: n_in features in, n_out classes out, hidden = 3*n_in.
    # TODO(synk): real LoadData() shapes/data unavailable; using synthetic inputs.
    B, n_in, n_out = 8, 32, 8

    key = jax.random.PRNGKey(0)
    kx, kp = jax.random.split(key)
    x = jax.random.normal(kx, (B, n_in), jnp.float32)
    w1, b1, w2, b2 = init_params(kp, n_in, n_out)
    ref = net_reference(x, w1, b1, w2, b2)

    # Default path: bf16 MXU inputs (prepared once), f32 epilogue.
    params_bf16 = prepare_params(w1, b1, w2, b2)  # matmul_dtype=bf16 default
    out = jax.block_until_ready(net_forward(x, params_bf16))
    assert out.shape == (B, n_out)
    assert jnp.allclose(jnp.sum(out, axis=1), 1.0, atol=1e-4)  # exact divide
    assert jnp.allclose(out, ref, atol=3e-2)                   # bf16 matmul tol

    # Strict-parity f32 path.
    params_f32 = prepare_params(w1, b1, w2, b2, matmul_dtype=jnp.float32)
    out_f32 = jax.block_until_ready(net_forward(x, params_f32))
    assert jnp.allclose(out_f32, ref, atol=5e-3)

    # Multi-step grid (megacore-friendly split, no batch padding needed).
    B2 = 256
    x2 = jax.random.normal(jax.random.PRNGKey(1), (B2, n_in), jnp.float32)
    out2 = jax.block_until_ready(net_forward(x2, params_f32))
    ref2 = net_reference(x2, w1, b1, w2, b2)
    assert out2.shape == (B2, n_out)
    assert jnp.allclose(out2, ref2, atol=5e-3)
    assert jnp.allclose(jnp.sum(out2, axis=1), 1.0, atol=1e-4)

    # Ragged batch (padded final tile path).
    B3 = 100
    x3 = jax.random.normal(jax.random.PRNGKey(2), (B3, n_in), jnp.float32)
    out3 = jax.block_until_ready(net_forward(x3, params_bf16))
    ref3 = net_reference(x3, w1, b1, w2, b2)
    assert out3.shape == (B3, n_out)
    assert jnp.allclose(out3, ref3, atol=3e-2)

    print("KERNEL_OK")
</pallas_src>

<mosaic_0001>
module attributes {stable_mosaic.version = 11 : i64} {
  func.func @kernel(%arg0: i32, %arg1: memref<8x32xf32, #tpu.memory_space<vmem>>, %arg2: memref<32x128xbf16, #tpu.memory_space<vmem>>, %arg3: memref<1x128xf32, #tpu.memory_space<vmem>>, %arg4: memref<128x128xbf16, #tpu.memory_space<vmem>>, %arg5: memref<1x128xf32, #tpu.memory_space<vmem>>, %arg6: memref<8x8xf32, #tpu.memory_space<vmem>>) attributes {dimension_semantics = [#tpu.dimension_semantics<parallel>], iteration_bounds = array<i64: 1>, scalar_prefetch = 0 : i64, scratch_operands = 0 : i64, tpu.core_type = #tpu.core_type<tc>, window_params = [{transform_indices = @transform_0, window_bounds = array<i64: 8, 32>}, {pipeline_mode = #tpu.pipeline_mode<synchronous>, transform_indices = @transform_1, window_bounds = array<i64: 32, 128>}, {pipeline_mode = #tpu.pipeline_mode<synchronous>, transform_indices = @transform_2, window_bounds = array<i64: 1, 128>}, {pipeline_mode = #tpu.pipeline_mode<synchronous>, transform_indices = @transform_3, window_bounds = array<i64: 128, 128>}, {pipeline_mode = #tpu.pipeline_mode<synchronous>, transform_indices = @transform_4, window_bounds = array<i64: 1, 128>}, {transform_indices = @transform_5, window_bounds = array<i64: 8, 8>}]} {
    %c0 = arith.constant 0 : index
    %c0_0 = arith.constant 0 : index
    %0 = vector.load %arg1[%c0, %c0_0] : memref<8x32xf32, #tpu.memory_space<vmem>>, vector<8x32xf32>
    %1 = arith.truncf %0 : vector<8x32xf32> to vector<8x32xbf16>
    %c0_1 = arith.constant 0 : index
    %c0_2 = arith.constant 0 : index
    %2 = vector.load %arg2[%c0_1, %c0_2] : memref<32x128xbf16, #tpu.memory_space<vmem>>, vector<32x128xbf16>
    %cst = arith.constant dense<0.000000e+00> : vector<8x128xf32>
    %3 = tpu.matmul %1, %2, %cst {dimension_numbers = #tpu.dot_dimension_numbers<[1], [0], [0], [1], [0, 0, 1, 1], [], []>} : vector<8x32xbf16>, vector<32x128xbf16>, vector<8x128xf32> -> vector<8x128xf32>
    %c0_3 = arith.constant 0 : index
    %c0_4 = arith.constant 0 : index
    %4 = vector.load %arg3[%c0_3, %c0_4] : memref<1x128xf32, #tpu.memory_space<vmem>>, vector<1x128xf32>
    %5 = vector.broadcast %4 : vector<1x128xf32> to vector<8x128xf32>
    %6 = arith.addf %3, %5 : vector<8x128xf32>
    %cst_5 = arith.constant 0.000000e+00 : f32
    %7 = vector.broadcast %cst_5 : f32 to vector<8x128xf32>
    %8 = arith.maximumf %6, %7 : vector<8x128xf32>
    %9 = arith.truncf %8 : vector<8x128xf32> to vector<8x128xbf16>
    %c0_6 = arith.constant 0 : index
    %c0_7 = arith.constant 0 : index
    %10 = vector.load %arg4[%c0_6, %c0_7] : memref<128x128xbf16, #tpu.memory_space<vmem>>, vector<128x128xbf16>
    %cst_8 = arith.constant dense<0.000000e+00> : vector<8x128xf32>
    %11 = tpu.matmul %9, %10, %cst_8 {dimension_numbers = #tpu.dot_dimension_numbers<[1], [0], [0], [1], [0, 0, 1, 1], [], []>} : vector<8x128xbf16>, vector<128x128xbf16>, vector<8x128xf32> -> vector<8x128xf32>
    %c0_9 = arith.constant 0 : index
    %c0_10 = arith.constant 0 : index
    %12 = vector.load %arg5[%c0_9, %c0_10] : memref<1x128xf32, #tpu.memory_space<vmem>>, vector<1x128xf32>
    %13 = vector.broadcast %12 : vector<1x128xf32> to vector<8x128xf32>
    %14 = arith.addf %11, %13 : vector<8x128xf32>
    %cst_11 = arith.constant dense<0xFF800000> : vector<8xf32>
    %15 = vector.multi_reduction <maximumf>, %14, %cst_11 [1] : vector<8x128xf32> to vector<8xf32>
    %16 = vector.shape_cast %15 : vector<8xf32> to vector<8x1xf32>
    %17 = vector.broadcast %16 : vector<8x1xf32> to vector<8x128xf32>
    %18 = arith.subf %14, %17 : vector<8x128xf32>
    %19 = math.exp %18 : vector<8x128xf32>
    %cst_12 = arith.constant dense<0.000000e+00> : vector<8xf32>
    %20 = vector.multi_reduction <add>, %19, %cst_12 [1] : vector<8x128xf32> to vector<8xf32>
    %21 = vector.shape_cast %20 : vector<8xf32> to vector<8x1xf32>
    %22 = vector.broadcast %21 : vector<8x1xf32> to vector<8x128xf32>
    %23 = arith.divf %19, %22 : vector<8x128xf32>
    %24 = vector.extract_strided_slice %23 {offsets = [0, 0], sizes = [8, 8], strides = [1, 1]} : vector<8x128xf32> to vector<8x8xf32>
    %c0_13 = arith.constant 0 : index
    %c0_14 = arith.constant 0 : index
    %25 = vector.load %arg6[%c0_13, %c0_14] : memref<8x8xf32, #tpu.memory_space<vmem>>, vector<8x8xf32>
    tpu.vector_store %arg6[%c0_13, %c0_14], %24 {strides = array<i32>} : memref<8x8xf32, #tpu.memory_space<vmem>>, vector<8x8xf32>,
    return
  }
  func.func @transform_0(%arg0: i32) -> (i32, i32) {
    %c0_i32 = arith.constant 0 : i32
    %c0_i32_0 = arith.constant 0 : i32
    return %arg0, %c0_i32 : i32, i32
  }
  func.func @transform_1(%arg0: i32) -> (i32, i32) {
    %c0_i32 = arith.constant 0 : i32
    %c0_i32_0 = arith.constant 0 : i32
    %c0_i32_1 = arith.constant 0 : i32
    return %c0_i32, %c0_i32_0 : i32, i32
  }
  func.func @transform_2(%arg0: i32) -> (i32, i32) {
    %c0_i32 = arith.constant 0 : i32
    %c0_i32_0 = arith.constant 0 : i32
    %c0_i32_1 = arith.constant 0 : i32
    return %c0_i32, %c0_i32_0 : i32, i32
  }
  func.func @transform_3(%arg0: i32) -> (i32, i32) {
    %c0_i32 = arith.constant 0 : i32
    %c0_i32_0 = arith.constant 0 : i32
    %c0_i32_1 = arith.constant 0 : i32
    return %c0_i32, %c0_i32_0 : i32, i32
  }
  func.func @transform_4(%arg0: i32) -> (i32, i32) {
    %c0_i32 = arith.constant 0 : i32
    %c0_i32_0 = arith.constant 0 : i32
    %c0_i32_1 = arith.constant 0 : i32
    return %c0_i32, %c0_i32_0 : i32, i32
  }
  func.func @transform_5(%arg0: i32) -> (i32, i32) {
    %c0_i32 = arith.constant 0 : i32
    %c0_i32_0 = arith.constant 0 : i32
    return %arg0, %c0_i32 : i32, i32
  }
}

</mosaic_0001>

<bundles_post_ra>
// kernel: tpu_custom_call.1
= control target key start
LH: loop header
LB: loop body
LE: loop exit
PB: predicated region body
PF: predicated region fallthrough
CT: control target
= control target key end

     0   :  { %10 = vsyncpa [#allocation3], 0  ;;  %s487_s0 = inlined_call_operand.hbm [shape: f32[8,32], index: 0, kind: input, shape index: {}]   ;;  %s488_s1 = inlined_call_operand.hbm [shape: bf16[32,128], index: 1, kind: input, shape index: {}]   ;;  %s489_s2 = inlined_call_operand.vmem [shape: f32[1,128], index: 2, kind: input, shape index: {}]   ;;  %s490_s3 = inlined_call_operand.hbm [shape: bf16[128,128], index: 3, kind: input, shape index: {}]   ;;  %s491_s4 = inlined_call_operand.vmem [shape: f32[1,128], index: 4, kind: input, shape index: {}]   ;;  %s492_s5 = inlined_call_operand.hbm [shape: f32[8,8], index: 5, kind: output, shape index: {}]  }
   0x1   :  { %11 = vsyncpa [#allocation6], 0 }
   0x2   :  { %12 = vsyncpa [#allocation4], 0  ;;  %s431_s18 = smov [#allocation5]  }
   0x3   :  { %s28_s19 = sshll.u32 %s431_s18, 4  ;;  %s29_s19 = int_to_ptr.vmem [resolvable:$true] %s28_s19 }
   0x4   :  { %s353_s20 = scalar_lea.vmem %s29_s19, 256  ;;  %p358_p1 = scmp.lt.s32.totalorder %s29_s19, %s29_s19 }
   0x5   :  { %p354_p0 = scmp.ne.s32.totalorder %s29_s19, %s353_s20  ;;  %p359_p2 = scmp.lt.s32.totalorder %s353_s20, %s353_s20 }
   0x7   :  { %p360_p3 = por %p359_p2, %p358_p1 }
   0x9   :  { %p361_p4 = pnand %p360_p3, %p354_p0 }
   0xb   :  { %364 = shalt.err (!%p361_p4)
}
   0xc   :  { %s432_s21 = smov 64   ;;  %s433_s22 = smov 4  }
   0xd   :  { %34 = dma.hbm_to_vmem [thread:$0]  %s488_s1, 256, %s29_s19, [#allocation6], %s432_s21, %s432_s21, %s433_s22  }
   0xe   :  { %s434_s25 = smov [#allocation2]   ;;  %s435_s27 = smov [#allocation7]  }
   0xf   :  { %s19_s26 = sshll.u32 %s434_s25, 4  ;;  %s42_s28 = sshll.u32 %s435_s27, 4  ;;  %s20_s26 = int_to_ptr.vmem [resolvable:$true] %s19_s26  ;;  %s43_s28 = int_to_ptr.vmem [resolvable:$true] %s42_s28 }
  0x10   :  { %s373_s29 = scalar_lea.vmem %s20_s26, 128  ;;  %p378_p6 = scmp.lt.s32.totalorder %s20_s26, %s20_s26 }
  0x11   :  { %p374_p5 = scmp.ne.s32.totalorder %s20_s26, %s373_s29  ;;  %p379_p7 = scmp.lt.s32.totalorder %s373_s29, %s373_s29 }
  0x13   :  { %p380_p8 = por %p379_p7, %p378_p6 }
  0x15   :  { %p381_p9 = pnand %p380_p8, %p374_p5 }
  0x17   :  { %384 = shalt.err (!%p381_p9)
}
  0x18   :  { %22 = dma.hbm_to_vmem [thread:$0]  %s487_s0, 128, %s20_s26, [#allocation3]  }
  0x19   :  { %s393_s7 = scalar_lea.vmem %s43_s28, 1024  ;;  %p398_p11 = scmp.lt.s32.totalorder %s43_s28, %s43_s28 }
  0x1a   :  { %p394_p10 = scmp.ne.s32.totalorder %s43_s28, %s393_s7  ;;  %p399_p12 = scmp.lt.s32.totalorder %s393_s7, %s393_s7 }
  0x1c   :  { %p400_p13 = por %p399_p12, %p398_p11 }
  0x1e   :  { %p401_p0 = pnand %p400_p13, %p394_p10 }
  0x20   :  { %404 = shalt.err (!%p401_p0)
}
  0x21   :  { %48 = dma.hbm_to_vmem [thread:$0]  %s490_s3, 1024, %s43_s28, [#allocation6], %s432_s21, %s432_s21, %s433_s22  }
  0x22   :  { %425 = dma.done.wait [#allocation3], 128  }
  0x23   :  { %426 = vsyncadd [#allocation3], 4294967168 }
  0x24   :  { %427 = dma.done.wait [#allocation6], 1280  }
  0x25   :  { %428 = vsyncadd [#allocation6], 4294966016  ;;  %v436_v0 = vmov 0.0   ;;  %vm437_vm0 = vmmov 0   ;;  %v331_v1 = vld [vmem:[#allocation5 + $0x8] sm:$0xff]   ;;  %v332_v2 = vld [vmem:[#allocation5] sm:$0xff]  }
  0x26   :  { %295 = vmatprep.subr.bf16.mxu0 %v436_v0  ;;  %299 = vmatprep.mubr.msk.bf16.mxu0 %vm437_vm0, %v436_v0  ;;  %v61_v3 = vld [vmem:[#allocation2] sm:$0xff]  ;;  %v333_v4 = vld [vmem:[#allocation7 + $0x38] sm:$0xff]   ;;  %v334_v6 = vld [vmem:[#allocation7 + $0x30] sm:$0xff]   ;;  %vm86_vm1 = vcmask 261120   ;;  %vm252_vm2 = vcmask 64512  }
  0x27   :  { %303 = vmatprep.subr.bf16.mxu1 %v436_v0  ;;  %319 = vmatprep.mubr.msk.bf16.mxu1 %vm437_vm0, %v436_v0  ;;  %v62_v5 = vpack.c.bf16 %v61_v3, %v61_v3  ;;  %v335_v7 = vld [vmem:[#allocation7 + $0x28] sm:$0xff]   ;;  %v336_v8 = vld [vmem:[#allocation7 + $0x20] sm:$0xff]   ;;  %v337_v9 = vld [vmem:[#allocation7 + $0x18] sm:$0xff]  }
  0x28   :  { %296 = vmatpush3.bf16.msra.mxu0 %v331_v1  ;;  %304 = vmatpush3.bf16.msra.mxu1 %v333_v4  ;;  %v338_v10 = vld [vmem:[#allocation7 + $0x10] sm:$0xff]   ;;  %v339_v11 = vld [vmem:[#allocation7 + $0x8] sm:$0xff]   ;;  %v340_v12 = vld [vmem:[#allocation7] sm:$0xff]  }
  0x29   :  { %297 = vmatprep.subr.bf16.mxu0 %v436_v0  ;;  %305 = vmatprep.subr.bf16.mxu1 %v436_v0  ;;  %v270_v13 = vld [vmem:[%s489_s2] ss:$0 sm:$0xff]  ;;  %s438_s2 = smov [#allocation8]  }
  0x2a   :  { %v274_v21 = vld [vmem:[%s491_s4] ss:$0 sm:$0xff]  ;;  %s260_s11 = sshll.u32 %s438_s2, 4  ;;  %s261_s11 = int_to_ptr.vmem [resolvable:$true] %s260_s11 }
  0x2b   :  { %s405_s4 = scalar_lea.vmem %s261_s11, 128  ;;  %p410_p2 = scmp.lt.s32.totalorder %s261_s11, %s261_s11 }
  0x2c   :  { %298 = vmatpush3.bf16.msra.mxu0 %v332_v2  ;;  %306 = vmatpush3.bf16.msra.mxu1 %v334_v6  ;;  %p406_p1 = scmp.ne.s32.totalorder %s261_s11, %s405_s4  ;;  %p411_p3 = scmp.lt.s32.totalorder %s405_s4, %s405_s4 }
  0x2d   :  { %307 = vmatprep.subr.bf16.mxu1 %v436_v0 }
  0x2e   :  { %p412_p4 = por %p411_p3, %p410_p2 }
  0x2f   :  { %300 = vmatmul.mubr.msk.bf16.vlgmr.msra.gmra.mxu0 %vm86_vm1, %v62_v5 }
  0x30   :  { %308 = vmatpush3.bf16.msra.mxu1 %v335_v7  ;;  %p413_p5 = pnand %p412_p4, %p406_p1 }
  0x31   :  { %309 = vmatprep.subr.bf16.mxu1 %v436_v0 }
  0x34   :  { %310 = vmatpush3.bf16.msra.mxu1 %v336_v8 }
  0x35   :  { %311 = vmatprep.subr.bf16.mxu1 %v436_v0 }
  0x38   :  { %312 = vmatpush3.bf16.msra.mxu1 %v337_v9 }
  0x39   :  { %313 = vmatprep.subr.bf16.mxu1 %v436_v0 }
  0x3c   :  { %314 = vmatpush3.bf16.msra.mxu1 %v338_v10 }
  0x3d   :  { %315 = vmatprep.subr.bf16.mxu1 %v436_v0 }
  0x40   :  { %316 = vmatpush3.bf16.msra.mxu1 %v339_v11 }
  0x41   :  { %317 = vmatprep.subr.bf16.mxu1 %v436_v0 }
  0x44   :  { %318 = vmatpush3.bf16.msra.mxu1 %v340_v12 }
  0xef   :  { %v124_v14 = vpop.f32.mrf.mxu0 }
  0xf0   :  { %v125_v15 = vadd.f32 %v270_v13, %v124_v14 }
  0xf1   :  { %v301_v16 = vpop.f32.mrf.mxu0 }
  0xf2   :  { %v130_v17 = vmax.f32 %v125_v15, 0.0 }
  0xf3   :  { %v127_v18 = vpop.f32.mrf.mxu0 }
  0xf4   :  { %v131_v19 = vpack.c.bf16 %v130_v17, %v130_v17 }
  0xf5   :  { %v302_v20 = vpop.f32.mrf.mxu0 }
  0xf6   :  { %320 = vmatmul.mubr.bf16.vlgmr.msra.gmra.mxu1 %v131_v19 }
 0x1b6   :  { %v237_v22 = vpop.f32.mrf.mxu1 }
 0x1b7   :  { %v238_v23 = vadd.f32 %v274_v21, %v237_v22 }
 0x1b8   :  { %v321_v24 = vpop.f32.mrf.mxu1 }
 0x1b9   :  { %243 = vmax.xlane.f32.xlu0 %v238_v23 }
 0x1ba   :  { %v240_v25 = vpop.f32.mrf.mxu1 }
 0x1bc   :  { %v322_v26 = vpop.f32.mrf.mxu1 }
 0x242   :  { %v244_v27 = vpop.xlane.xlu0 %243 }
 0x243   :  { %v245_v28 = vsub.f32 %v238_v23, %v244_v27 }
 0x245   :  { %v246_v29 = vmul.f32 1.442695, %v245_v28 }
 0x247   :  { %341 = vpow2.f32 %v246_v29 }
 0x254   :  { %v342_v30 = vpop.eup %341 }
 0x255   :  { %248 = vadd.xlane.f32.xlu0 %v342_v30 }
 0x2de   :  { %v249_v31 = vpop.xlane.xlu0 %248 }
 0x2df   :  { %343 = vrcp.f32 %v249_v31 }
 0x2ec   :  { %v344_v32 = vpop.eup %343 }
 0x2ed   :  { %v251_v33 = vmul.f32 %v344_v32, %v342_v30 }
 0x2ef   :  { %253 = vst.msk [vmem:[#allocation8] sm:$0xff] %vm252_vm2, %v251_v33 }
 0x2f0   :  { %416 = shalt.err (!%p413_p5)
}
 0x2f1   :  { %263 = dma.vmem_to_hbm [thread:$0]  %s261_s11, 128, %s492_s5, [#allocation4]  }
 0x2f2   :  { %429 = dma.done.wait [#allocation4], 128  }
 0x2f3   :  { %430 = vsyncadd [#allocation4], 4294967168 }
 0x2f4   :  { %267 = vsyncpa [#allocation3], 1 }
 0x2f5   :  { %268 = vsyncpa [#allocation6], 1 }
 0x2f6   :  { %269 = vsyncpa [#allocation4], 1 }

</bundles_post_ra>
